<compile_context>
chip_gen: v6e
topology: v6e:2x2x1
jax: 0.10.0
libtpu: 0.0.40
codegen_flags: <defaults>
</compile_context>

<pallas_src>
import functools
import math

import jax
import jax.numpy as jnp
from jax import lax
from jax.experimental import pallas as pl
from jax.experimental.pallas import tpu as pltpu


def _pick_tile(n, target, multiples=(128, 8)):
    """Largest tile <= target dividing n, preferring MXU/lane-friendly multiples."""
    if n <= target:
        return n
    for m in multiples:
        t = (target // m) * m
        while t >= m:
            if n % t == 0:
                return t
            t -= m
    return n


def _vmem_limit_bytes():
    """~75% of physical VMEM: ~96 MiB on v5e/v6e (128 MiB), ~48 MiB on v7x (64 MiB)."""
    try:
        phys = pltpu.get_tpu_info().vmem_capacity_bytes
    except Exception:
        phys = 64 * 1024 * 1024
    return int(min(96 * 1024 * 1024, phys * 3 // 4))


# ---------------------------------------------------------------------------
# Kernel 1: fused QKV projection   (B*T, Din) @ (Din, 3*Dout)
#   - single lane-dense (tm, 3*Dout) output (no masked partial stores / slices)
#   - contracting (Din) axis tiled with an f32 accumulator (pl.when finalize)
# ---------------------------------------------------------------------------
def _qkv_proj_kernel(x_ref, w_ref, o_ref, acc_ref):
    @pl.when(pl.program_id(1) == 0)
    def _init():
        acc_ref[...] = jnp.zeros_like(acc_ref)

    acc_ref[...] += jnp.dot(x_ref[...], w_ref[...],
                            preferred_element_type=jnp.float32)

    @pl.when(pl.program_id(1) == pl.num_programs(1) - 1)
    def _finalize():
        o_ref[...] = acc_ref[...].astype(o_ref.dtype)


# ---------------------------------------------------------------------------
# Kernel 2: causal flash attention with online softmax
# ---------------------------------------------------------------------------
def _flash_attn_kernel(q_ref, k_ref, v_ref, o_ref, m_sc, l_sc, acc_sc, *, tq, tk):
    qi = pl.program_id(1)
    kv = pl.program_id(2)
    q_start = qi * tq
    k_start = kv * tk

    @pl.when(kv == 0)
    def _init():
        m_sc[...] = jnp.full_like(m_sc, -jnp.inf)
        l_sc[...] = jnp.zeros_like(l_sc)
        acc_sc[...] = jnp.zeros_like(acc_sc)

    def scores():
        # Q @ K^T without an explicit transpose (shared contracting dim -> MXU).
        return lax.dot_general(q_ref[...], k_ref[...],
                               dimension_numbers=(((1,), (1,)), ((), ())),
                               preferred_element_type=jnp.float32)   # (tq, tk)

    def online_softmax_update(s):
        m_prev = m_sc[...]
        m_new = jnp.maximum(m_prev, jnp.max(s, axis=-1, keepdims=True))
        alpha = jnp.exp(m_prev - m_new)
        p = jnp.exp(s - m_new)
        l_sc[...] = alpha * l_sc[...] + jnp.sum(p, axis=-1, keepdims=True)
        acc_sc[...] = alpha * acc_sc[...] + jnp.dot(
            p.astype(v_ref.dtype), v_ref[...], preferred_element_type=jnp.float32)
        m_sc[...] = m_new

    # Classify this KV tile relative to the causal diagonal.
    intersects = k_start <= q_start + (tq - 1)    # tile has at least one allowed col
    needs_mask = k_start + (tk - 1) > q_start     # tile straddles the diagonal

    @pl.when(jnp.logical_and(intersects, jnp.logical_not(needs_mask)))
    def _interior():
        # Fully below the diagonal: no mask, no iota, no where.
        online_softmax_update(scores())

    @pl.when(jnp.logical_and(intersects, needs_mask))
    def _diagonal():
        s = scores()
        # col > row  <=>  (col_in_tile - row_in_tile) > q_start - k_start
        diff = (lax.broadcasted_iota(jnp.int32, (tq, tk), 1)
                - lax.broadcasted_iota(jnp.int32, (tq, tk), 0))
        s = jnp.where(diff > (q_start - k_start), -jnp.inf, s)
        online_softmax_update(s)

    @pl.when(kv == pl.num_programs(2) - 1)
    def _finalize():
        inv_l = pl.reciprocal(l_sc[...], approx=False)   # exact: finalize is rare
        o_ref[...] = (acc_sc[...] * inv_l).astype(o_ref.dtype)


# ---------------------------------------------------------------------------
# Wrapper
# ---------------------------------------------------------------------------
def causal_attention(x, wq, wk, wv, *, tq_target=512, tk_target=256):
    """x: (B, T, Din); wq/wk/wv: PyTorch nn.Linear layout (Dout, Din), no bias."""
    B, T, Din = x.shape
    Dout = wq.shape[0]
    itemsize = x.dtype.itemsize
    vmem_limit = _vmem_limit_bytes()

    # Fold the 1/sqrt(Dout) score scale into Wq; fuse the three weights.
    scale = 1.0 / math.sqrt(Dout)
    w_qkv = jnp.concatenate([wq.T * scale, wk.T, wv.T], axis=1).astype(x.dtype)

    # ---- QKV projection over the flattened (B*T, Din) matrix --------------
    M = B * T
    x2d = x.reshape(M, Din)
    tm = _pick_tile(M, 512)
    # Contracting tile is the lane dim of the x block: multiple of 128 or full Din.
    tkk = _pick_tile(Din, 512, multiples=(128,))

    proj_cost = pl.CostEstimate(
        flops=int(2 * M * Din * 3 * Dout),
        transcendentals=0,
        bytes_accessed=int((M * Din + pl.cdiv(M, tm) * Din * 3 * Dout
                            + M * 3 * Dout) * itemsize))

    qkv = pl.pallas_call(
        _qkv_proj_kernel,
        out_shape=jax.ShapeDtypeStruct((M, 3 * Dout), x.dtype),
        grid_spec=pltpu.PrefetchScalarGridSpec(
            num_scalar_prefetch=0,
            grid=(M // tm, Din // tkk),
            in_specs=[
                pl.BlockSpec((tm, tkk), lambda i, k: (i, k)),
                pl.BlockSpec((tkk, 3 * Dout), lambda i, k: (k, 0)),
            ],
            out_specs=pl.BlockSpec((tm, 3 * Dout), lambda i, k: (i, 0)),
            scratch_shapes=[pltpu.VMEM((tm, 3 * Dout), jnp.float32)],
        ),
        compiler_params=pltpu.CompilerParams(
            dimension_semantics=("parallel", "arbitrary"),
            vmem_limit_bytes=vmem_limit),
        cost_estimate=proj_cost,
    )(x2d, w_qkv)

    q = qkv[:, :Dout].reshape(B, T, Dout)
    k = qkv[:, Dout:2 * Dout].reshape(B, T, Dout)
    v = qkv[:, 2 * Dout:].reshape(B, T, Dout)

    # ---- Flash attention ----------------------------------------------------
    if B == 1:
        # Keep >= 2 parallel q tiles so a second TensorCore (v7x) gets work.
        tq_target = min(tq_target, max(128, T // 2))
    tq = _pick_tile(T, tq_target)
    tk = _pick_tile(T, tk_target)
    n_kv = T // tk

    def q_index_map(b, qi, kv):
        return (b, qi, 0)

    def kv_index_map(b, qi, kv):
        # KV tiles fully above the causal diagonal are never read: point them at
        # block 0 (already the first block needed by the next q row) so Pallas
        # issues no fresh DMA for them; compute is skipped by pl.when.
        needed = kv * tk <= qi * tq + (tq - 1)
        return (b, jnp.where(needed, kv, 0), 0)

    attn_cost = pl.CostEstimate(
        flops=int(2 * B * T * T * Dout),            # ~causal half of QK^T + PV
        transcendentals=int(B * T * T // 2),
        bytes_accessed=int(B * T * Dout * (2 + 2 * (T // tq)) * itemsize))

    out = pl.pallas_call(
        functools.partial(_flash_attn_kernel, tq=tq, tk=tk),
        out_shape=jax.ShapeDtypeStruct((B, T, Dout), x.dtype),
        grid_spec=pltpu.PrefetchScalarGridSpec(
            num_scalar_prefetch=0,
            grid=(B, T // tq, n_kv),
            in_specs=[
                pl.BlockSpec((pl.Squeezed(), tq, Dout), q_index_map),
                pl.BlockSpec((pl.Squeezed(), tk, Dout), kv_index_map),
                pl.BlockSpec((pl.Squeezed(), tk, Dout), kv_index_map),
            ],
            out_specs=pl.BlockSpec((pl.Squeezed(), tq, Dout), q_index_map),
            scratch_shapes=[
                pltpu.VMEM((tq, 1), jnp.float32),      # running max m
                pltpu.VMEM((tq, 1), jnp.float32),      # running denom l
                pltpu.VMEM((tq, Dout), jnp.float32),   # running output acc
            ],
        ),
        compiler_params=pltpu.CompilerParams(
            dimension_semantics=("parallel", "parallel", "arbitrary"),
            vmem_limit_bytes=vmem_limit),
        cost_estimate=attn_cost,
    )(q, k, v)
    return out


# ---------------------------------------------------------------------------
# Pure-JAX reference (matches the PyTorch module, eval mode)
# ---------------------------------------------------------------------------
def _reference(x, wq, wk, wv):
    q = x @ wq.T
    k = x @ wk.T
    v = x @ wv.T
    s = q @ jnp.swapaxes(k, 1, 2)
    T = x.shape[1]
    mask = jnp.triu(jnp.ones((T, T), dtype=bool), k=1)
    s = jnp.where(mask[None], -jnp.inf, s)
    w = jax.nn.softmax(s / (q.shape[-1] ** 0.5), axis=-1)
    return w @ v


if __name__ == "__main__":
    # Module hyper-params (synthetic, deterministic)
    B, T = 2, 8
    in_dim, out_dim = 32, 32
    dropout_percentage = 0.1  # eval-mode -> identity

    key = jax.random.PRNGKey(0)
    kx, kq, kk, kv_key = jax.random.split(key, 4)

    x = jax.random.normal(kx, (B, T, in_dim), dtype=jnp.float32)

    # PyTorch nn.Linear weight shape (out_dim, in_dim), init U(-1/sqrt(in), 1/sqrt(in)).
    bound = 1.0 / (in_dim ** 0.5)
    wq = jax.random.uniform(kq, (out_dim, in_dim), minval=-bound, maxval=bound,
                            dtype=jnp.float32)
    wk = jax.random.uniform(kk, (out_dim, in_dim), minval=-bound, maxval=bound,
                            dtype=jnp.float32)
    wv = jax.random.uniform(kv_key, (out_dim, in_dim), minval=-bound, maxval=bound,
                            dtype=jnp.float32)

    out = causal_attention(x, wq, wk, wv)
    out = jax.block_until_ready(out)

    ref = _reference(x, wq, wk, wv)
    assert out.shape == (B, T, out_dim)
    assert jnp.allclose(out, ref, atol=1e-3, rtol=1e-3), "mismatch vs reference"

    print("KERNEL_OK")
</pallas_src>

<mosaic_0001>
module attributes {stable_mosaic.version = 11 : i64} {
  func.func @_qkv_proj_kernel(%arg0: i32, %arg1: i32, %arg2: memref<16x32xf32, #tpu.memory_space<vmem>>, %arg3: memref<32x96xf32, #tpu.memory_space<vmem>>, %arg4: memref<16x96xf32, #tpu.memory_space<vmem>>, %arg5: memref<16x96xf32, #tpu.memory_space<vmem>>) attributes {dimension_semantics = [#tpu.dimension_semantics<parallel>, #tpu.dimension_semantics<arbitrary>], iteration_bounds = array<i64: 1, 1>, scalar_prefetch = 0 : i64, scratch_operands = 1 : i64, tpu.core_type = #tpu.core_type<tc>, window_params = [{transform_indices = @transform_0, window_bounds = array<i64: 16, 32>}, {transform_indices = @transform_1, window_bounds = array<i64: 32, 96>}, {transform_indices = @transform_2, window_bounds = array<i64: 16, 96>}]} {
    %c0_i32 = arith.constant 0 : i32
    %0 = arith.cmpi eq, %arg1, %c0_i32 : i32
    %1 = arith.extui %0 : i1 to i32
    %c0_i32_0 = arith.constant 0 : i32
    %2 = arith.cmpi ne, %1, %c0_i32_0 : i32
    scf.if %2 {
      %cst_10 = arith.constant 0.000000e+00 : f32
      %12 = vector.broadcast %cst_10 : f32 to vector<16x96xf32>
      %c0_11 = arith.constant 0 : index
      %c0_12 = arith.constant 0 : index
      %13 = vector.load %arg5[%c0_11, %c0_12] : memref<16x96xf32, #tpu.memory_space<vmem>>, vector<16x96xf32>
      tpu.vector_store %arg5[%c0_11, %c0_12], %12 {strides = array<i32>} : memref<16x96xf32, #tpu.memory_space<vmem>>, vector<16x96xf32>,
    } else {
    }
    %c0 = arith.constant 0 : index
    %c0_1 = arith.constant 0 : index
    %3 = vector.load %arg5[%c0, %c0_1] : memref<16x96xf32, #tpu.memory_space<vmem>>, vector<16x96xf32>
    %c0_2 = arith.constant 0 : index
    %c0_3 = arith.constant 0 : index
    %4 = vector.load %arg2[%c0_2, %c0_3] : memref<16x32xf32, #tpu.memory_space<vmem>>, vector<16x32xf32>
    %c0_4 = arith.constant 0 : index
    %c0_5 = arith.constant 0 : index
    %5 = vector.load %arg3[%c0_4, %c0_5] : memref<32x96xf32, #tpu.memory_space<vmem>>, vector<32x96xf32>
    %cst = arith.constant dense<0.000000e+00> : vector<16x96xf32>
    %6 = tpu.matmul %4, %5, %cst {dimension_numbers = #tpu.dot_dimension_numbers<[1], [0], [0], [1], [0, 0, 1, 1], [], []>} : vector<16x32xf32>, vector<32x96xf32>, vector<16x96xf32> -> vector<16x96xf32>
    %7 = arith.addf %3, %6 : vector<16x96xf32>
    %c0_6 = arith.constant 0 : index
    %c0_7 = arith.constant 0 : index
    %8 = vector.load %arg5[%c0_6, %c0_7] : memref<16x96xf32, #tpu.memory_space<vmem>>, vector<16x96xf32>
    tpu.vector_store %arg5[%c0_6, %c0_7], %7 {strides = array<i32>} : memref<16x96xf32, #tpu.memory_space<vmem>>, vector<16x96xf32>,
    %c0_i32_8 = arith.constant 0 : i32
    %9 = arith.cmpi eq, %arg1, %c0_i32_8 : i32
    %10 = arith.extui %9 : i1 to i32
    %c0_i32_9 = arith.constant 0 : i32
    %11 = arith.cmpi ne, %10, %c0_i32_9 : i32
    scf.if %11 {
      %c0_10 = arith.constant 0 : index
      %c0_11 = arith.constant 0 : index
      %12 = vector.load %arg5[%c0_10, %c0_11] : memref<16x96xf32, #tpu.memory_space<vmem>>, vector<16x96xf32>
      %c0_12 = arith.constant 0 : index
      %c0_13 = arith.constant 0 : index
      %13 = vector.load %arg4[%c0_12, %c0_13] : memref<16x96xf32, #tpu.memory_space<vmem>>, vector<16x96xf32>
      tpu.vector_store %arg4[%c0_12, %c0_13], %12 {strides = array<i32>} : memref<16x96xf32, #tpu.memory_space<vmem>>, vector<16x96xf32>,
    } else {
    }
    return
  }
  func.func @transform_0(%arg0: i32, %arg1: i32) -> (i32, i32) {
    %c0_i32 = arith.constant 0 : i32
    return %arg0, %arg1 : i32, i32
  }
  func.func @transform_1(%arg0: i32, %arg1: i32) -> (i32, i32) {
    %c0_i32 = arith.constant 0 : i32
    %c0_i32_0 = arith.constant 0 : i32
    return %arg1, %c0_i32 : i32, i32
  }
  func.func @transform_2(%arg0: i32, %arg1: i32) -> (i32, i32) {
    %c0_i32 = arith.constant 0 : i32
    %c0_i32_0 = arith.constant 0 : i32
    return %arg0, %c0_i32 : i32, i32
  }
}

</mosaic_0001>

<bundles_post_ra>
// kernel: tpu_custom_call.1
= control target key start
LH: loop header
LB: loop body
LE: loop exit
PB: predicated region body
PF: predicated region fallthrough
CT: control target
= control target key end

     0   :  { %7 = vsyncpa [#allocation4], 0  ;;  %s305_s0 = inlined_call_operand.hbm [shape: f32[16,32], index: 0, kind: input, shape index: {}]   ;;  %s306_s1 = inlined_call_operand.hbm [shape: f32[32,96], index: 1, kind: input, shape index: {}]   ;;  %s307_s2 = inlined_call_operand.hbm [shape: f32[16,96], index: 2, kind: output, shape index: {}]  }
   0x1   :  { %8 = vsyncpa [#allocation7], 0 }
   0x2   :  { %9 = vsyncpa [#allocation5], 0  ;;  %s258_s9 = smov [#allocation3]  }
   0x3   :  { %s15_s10 = sshll.u32 %s258_s9, 4  ;;  %s16_s10 = int_to_ptr.vmem [resolvable:$true] %s15_s10 }
   0x4   :  { %s200_s11 = scalar_lea.vmem %s16_s10, 256  ;;  %p205_p1 = scmp.lt.s32.totalorder %s16_s10, %s16_s10 }
   0x5   :  { %p201_p0 = scmp.ne.s32.totalorder %s16_s10, %s200_s11  ;;  %p206_p2 = scmp.lt.s32.totalorder %s200_s11, %s200_s11 }
   0x7   :  { %p207_p3 = por %p206_p2, %p205_p1 }
   0x9   :  { %p208_p4 = pnand %p207_p3, %p201_p0 }
   0xb   :  { %211 = shalt.err (!%p208_p4)
}
   0xc   :  { %s259_s12 = smov 128   ;;  %s260_s13 = smov 8  }
   0xd   :  { %21 = dma.hbm_to_vmem [thread:$0]  %s305_s0, 256, %s16_s10, [#allocation4], %s259_s12, %s259_s12, %s260_s13  }
   0xe   :  { %s261_s16 = smov [#allocation6]  }
   0xf   :  { %s27_s17 = sshll.u32 %s261_s16, 4  ;;  %s28_s17 = int_to_ptr.vmem [resolvable:$true] %s27_s17 }
  0x10   :  { %s220_s18 = scalar_lea.vmem %s28_s17, 512  ;;  %p225_p6 = scmp.lt.s32.totalorder %s28_s17, %s28_s17 }
  0x11   :  { %p221_p5 = scmp.ne.s32.totalorder %s28_s17, %s220_s18  ;;  %p226_p7 = scmp.lt.s32.totalorder %s220_s18, %s220_s18 }
  0x13   :  { %p227_p8 = por %p226_p7, %p225_p6 }
  0x15   :  { %p228_p9 = pnand %p227_p8, %p221_p5 }
  0x17   :  { %231 = shalt.err (!%p228_p9)
}
  0x18   :  { %33 = dma.hbm_to_vmem [thread:$0]  %s306_s1, 512, %s28_s17, [#allocation7], %s259_s12, %s259_s12, %s260_s13  }
  0x19   :  { %252 = dma.done.wait [#allocation4], 256  }
  0x1a   :  { %253 = vsyncadd [#allocation4], 4294967040 }
  0x1b   :  { %254 = dma.done.wait [#allocation7], 512  }
  0x1c   :  { %255 = vsyncadd [#allocation7], 4294966784  ;;  %vm44_vm0 = vcmask 785408   ;;  %v262_v0 = vmov 0.0   ;;  %vm55_vm1 = vcmask 261120   ;;  %v54_v1 = vld [vmem:[#allocation6 + $0x18] sm:$0xff] }
  0x1d   :  { %46 = vst.msk [vmem:[#allocation2 + $0x8] sm:$0xff] %vm44_vm0, %v262_v0  ;;  %45 = vst.msk [vmem:[#allocation2] sm:$0xff] %vm44_vm0, %v262_v0  ;;  %v53_v2 = vld [vmem:[#allocation6 + $0x10] sm:$0xff]  ;;  %175 = vmatprep.subr.mxu0 %v54_v1  ;;  %v52_v4 = vld [vmem:[#allocation6 + $0x8] sm:$0xff]  ;;  %s263_s0 = smov [#allocation8]  }
  0x1e   :  { %v49_v3 = vld [vmem:[#allocation3] sm:$0xff]  ;;  %176 = vmatpush3.msra.mxu0 %v54_v1  ;;  %v51_v5 = vld [vmem:[#allocation6] sm:$0xff]  ;;  %v50_v6 = vld [vmem:[#allocation3 + $0x8] sm:$0xff]  ;;  %s154_s1 = sshll.u32 %s263_s0, 4  ;;  %s155_s1 = int_to_ptr.vmem [resolvable:$true] %s154_s1 }
  0x1f   :  { %183 = vmatprep.mubr.msk.f32.mxu0 %vm55_vm1, %v49_v3  ;;  %177 = vmatprep.subr.mxu0 %v53_v2  ;;  %s232_s21 = scalar_lea.vmem %s155_s1, 256  ;;  %p237_p11 = scmp.lt.s32.totalorder %s155_s1, %s155_s1 }
  0x20   :  { %178 = vmatpush3.msra.mxu0 %v53_v2  ;;  %p233_p10 = scmp.ne.s32.totalorder %s155_s1, %s232_s21  ;;  %p238_p12 = scmp.lt.s32.totalorder %s232_s21, %s232_s21 }
  0x21   :  { %179 = vmatprep.subr.mxu0 %v52_v4 }
  0x22   :  { %180 = vmatpush3.msra.mxu0 %v52_v4  ;;  %p239_p13 = por %p238_p12, %p237_p11 }
  0x23   :  { %181 = vmatprep.subr.mxu0 %v51_v5 }
  0x24   :  { %182 = vmatpush3.msra.mxu0 %v51_v5  ;;  %v48_v7 = vld [vmem:[#allocation2 + $0x8] sm:$0xff]  ;;  %v47_v9 = vld [vmem:[#allocation2] sm:$0xff]  ;;  %p240_p0 = pnand %p239_p13, %p233_p10 }
  0x25   :  { %184 = vmatmul.mubr.msk.f32.vlgmr.msra.gmra.mxu0 %vm55_vm1, %v50_v6 }
  0xe5   :  { %v185_v8 = vpop.f32.mrf.mxu0 }
  0xe6   :  { %v138_v10 = vadd.f32 %v185_v8, %v48_v7 }
  0xe7   :  { %v128_v11 = vpop.f32.mrf.mxu0 }
  0xe8   :  { %141 = vst.msk [vmem:[#allocation2 + $0x8] sm:$0xff] %vm44_vm0, %v138_v10  ;;  %v137_v12 = vadd.f32 %v128_v11, %v47_v9 }
  0xea   :  { %140 = vst.msk [vmem:[#allocation2] sm:$0xff] %vm44_vm0, %v137_v12 }
  0xef   :  { %v146_v13 = vld [vmem:[#allocation2 + $0x8] sm:$0xff] }
  0xf0   :  { %148 = vst.msk [vmem:[#allocation8 + $0x8] sm:$0xff] %vm44_vm0, %v146_v13 }
  0xf1   :  { %v145_v14 = vld [vmem:[#allocation2] sm:$0xff] }
  0xf2   :  { %147 = vst.msk [vmem:[#allocation8] sm:$0xff] %vm44_vm0, %v145_v14 }
  0xf3   :  { %243 = shalt.err (!%p240_p0)
}
  0xf4   :  { %160 = dma.vmem_to_hbm [thread:$0]  %s155_s1, 256, %s307_s2, [#allocation5], %s259_s12, %s259_s12, %s260_s13  }
  0xf5   :  { %256 = dma.done.wait [#allocation5], 256  }
  0xf6   :  { %257 = vsyncadd [#allocation5], 4294967040 }
  0xf7   :  { %164 = vsyncpa [#allocation4], 1 }
  0xf8   :  { %165 = vsyncpa [#allocation7], 1 }
  0xf9   :  { %166 = vsyncpa [#allocation5], 1 }

</bundles_post_ra>
